<compile_context>
chip_gen: v5e
topology: v5e:2x2
jax: 0.10.0
libtpu: 0.0.40
codegen_flags: <defaults>
</compile_context>

<pallas_src>
import jax
import jax.numpy as jnp
from jax.experimental import pallas as pl
from jax.experimental.pallas import tpu as pltpu


def _rmsle_partial_kernel(pred_ref, actual_ref, out_ref):
    """Per-tile partial sum of (log1p(pred) - log1p(actual))^2, reduced over
    the sublane (row) axis to a lane-dense (1, 128) output row."""
    p = pred_ref[...].astype(jnp.float32)
    a = actual_ref[...].astype(jnp.float32)
    d = jnp.log1p(p) - jnp.log1p(a)
    out_ref[...] = jnp.sum(d * d, axis=0, keepdims=True)


def rmsle_loss(pred, actual, *, tile_rows=2048, lanes=128):
    """RMSLE over all elements.

    Matches torch.sqrt(nn.MSELoss()(torch.log(pred + 1), torch.log(actual + 1))).
    """
    assert pred.shape == actual.shape, "pred/actual must have identical shapes"
    n_elems = pred.size
    assert n_elems > 0

    # Flatten in native dtype (kernel upcasts to f32).
    flat_p = pred.reshape(-1)
    flat_a = actual.reshape(-1)

    # Row geometry: rows padded to a multiple of 8 (sublane) and of tile_rows.
    rows_needed = -(-n_elems // lanes)
    rows8 = -(-rows_needed // 8) * 8
    tile_rows = min(int(tile_rows), rows8)
    tile_rows = max(8, (tile_rows // 8) * 8)
    rows = -(-rows8 // tile_rows) * tile_rows
    pad = rows * lanes - n_elems
    if pad:
        flat_p = jnp.pad(flat_p, (0, pad))
        flat_a = jnp.pad(flat_a, (0, pad))

    p2 = flat_p.reshape(rows, lanes)
    a2 = flat_a.reshape(rows, lanes)
    num_tiles = rows // tile_rows

    # Scoped-VMEM budget: 2 inputs x 2 pipeline buffers x block + headroom
    # for elementwise f32 temporaries; capped at 32 MiB (valid on v7x too).
    itemsize = jnp.dtype(p2.dtype).itemsize
    block_bytes = tile_rows * lanes * itemsize
    vmem_limit = int(min(max(6 * block_bytes + (4 << 20), 16 << 20), 32 << 20))

    partials = pl.pallas_call(
        _rmsle_partial_kernel,
        out_shape=jax.ShapeDtypeStruct((num_tiles, lanes), jnp.float32),
        grid_spec=pltpu.PrefetchScalarGridSpec(
            num_scalar_prefetch=0,
            grid=(num_tiles,),
            in_specs=[
                pl.BlockSpec((tile_rows, lanes), lambda i: (i, 0)),
                pl.BlockSpec((tile_rows, lanes), lambda i: (i, 0)),
            ],
            out_specs=pl.BlockSpec((1, lanes), lambda i: (i, 0)),
        ),
        compiler_params=pltpu.CompilerParams(
            dimension_semantics=("parallel",),
            vmem_limit_bytes=vmem_limit,
        ),
    )(p2, a2)

    # Tiny epilogue: combine per-tile lane partials, then sqrt(mean).
    return jnp.sqrt(jnp.sum(partials) / jnp.float32(n_elems))


if __name__ == "__main__":
    key = jax.random.PRNGKey(0)
    kp, ka = jax.random.split(key)

    # Small regression-style inputs, strictly positive so log(x + 1) is well
    # defined, as the original module assumes.
    shape = (2, 4, 16, 16)
    pred = jax.random.uniform(kp, shape, dtype=jnp.float32, minval=0.0, maxval=5.0)
    actual = jax.random.uniform(ka, shape, dtype=jnp.float32, minval=0.0, maxval=5.0)

    loss = rmsle_loss(pred, actual)
    jax.block_until_ready(loss)

    # Reference check in plain JAX (mirrors the PyTorch forward).
    ref = jnp.sqrt(jnp.mean((jnp.log1p(pred) - jnp.log1p(actual)) ** 2))
    assert jnp.allclose(loss, ref, rtol=1e-5, atol=1e-6), (loss, ref)

    print("KERNEL_OK")
</pallas_src>

<mosaic_0001>
module attributes {stable_mosaic.version = 11 : i64} {
  func.func @_rmsle_partial_kernel(%arg0: i32, %arg1: memref<16x128xf32, #tpu.memory_space<vmem>>, %arg2: memref<16x128xf32, #tpu.memory_space<vmem>>, %arg3: memref<1x128xf32, #tpu.memory_space<vmem>>) attributes {dimension_semantics = [#tpu.dimension_semantics<parallel>], iteration_bounds = array<i64: 1>, scalar_prefetch = 0 : i64, scratch_operands = 0 : i64, tpu.core_type = #tpu.core_type<tc>, window_params = [{transform_indices = @transform_0, window_bounds = array<i64: 16, 128>}, {transform_indices = @transform_1, window_bounds = array<i64: 16, 128>}, {transform_indices = @transform_2, window_bounds = array<i64: 1, 128>}]} {
    %c0 = arith.constant 0 : index
    %c0_0 = arith.constant 0 : index
    %0 = vector.load %arg1[%c0, %c0_0] : memref<16x128xf32, #tpu.memory_space<vmem>>, vector<16x128xf32>
    %c0_1 = arith.constant 0 : index
    %c0_2 = arith.constant 0 : index
    %1 = vector.load %arg2[%c0_1, %c0_2] : memref<16x128xf32, #tpu.memory_space<vmem>>, vector<16x128xf32>
    %2 = math.log1p %0 : vector<16x128xf32>
    %3 = math.log1p %1 : vector<16x128xf32>
    %4 = arith.subf %2, %3 : vector<16x128xf32>
    %5 = arith.mulf %4, %4 : vector<16x128xf32>
    %cst = arith.constant dense<0.000000e+00> : vector<128xf32>
    %6 = vector.multi_reduction <add>, %5, %cst [0] : vector<16x128xf32> to vector<128xf32>
    %7 = vector.shape_cast %6 : vector<128xf32> to vector<1x128xf32>
    %c0_3 = arith.constant 0 : index
    %c0_4 = arith.constant 0 : index
    %8 = vector.load %arg3[%c0_3, %c0_4] : memref<1x128xf32, #tpu.memory_space<vmem>>, vector<1x128xf32>
    tpu.vector_store %arg3[%c0_3, %c0_4], %7 {strides = array<i32>} : memref<1x128xf32, #tpu.memory_space<vmem>>, vector<1x128xf32>,
    return
  }
  func.func @transform_0(%arg0: i32) -> (i32, i32) {
    %c0_i32 = arith.constant 0 : i32
    %c0_i32_0 = arith.constant 0 : i32
    return %arg0, %c0_i32 : i32, i32
  }
  func.func @transform_1(%arg0: i32) -> (i32, i32) {
    %c0_i32 = arith.constant 0 : i32
    %c0_i32_0 = arith.constant 0 : i32
    return %arg0, %c0_i32 : i32, i32
  }
  func.func @transform_2(%arg0: i32) -> (i32, i32) {
    %c0_i32 = arith.constant 0 : i32
    %c0_i32_0 = arith.constant 0 : i32
    return %arg0, %c0_i32 : i32, i32
  }
}

</mosaic_0001>

<bundles_post_ra>
// kernel: tpu_custom_call.1
= control target key start
LH: loop header
LB: loop body
LE: loop exit
PB: predicated region body
PF: predicated region fallthrough
CT: control target
= control target key end

     0   :  { %7 = vsyncpa [#allocation3], 0  ;;  %s240_s0 = inlined_call_operand.hbm [shape: f32[16,128], index: 0, kind: input, shape index: {}]   ;;  %s241_s1 = inlined_call_operand.hbm [shape: f32[16,128], index: 1, kind: input, shape index: {}]   ;;  %s242_s2 = inlined_call_operand.hbm [shape: f32[1,128], index: 2, kind: output, shape index: {}]  }
   0x1   :  { %8 = vsyncpa [#allocation6], 0 }
   0x2   :  { %9 = vsyncpa [#allocation4], 0  ;;  %s14_s11 = sshll.u32 %s240_s0, 4  ;;  %s205_s12 = smov [#allocation2]   ;;  %s15_s11 = int_to_ptr.hbm [resolvable:$true] %s14_s11 }
   0x3   :  { %s16_s13 = sshll.u32 %s205_s12, 4  ;;  %s27_s16 = sshll.u32 %s241_s1, 4  ;;  %s17_s13 = int_to_ptr.vmem [resolvable:$true] %s16_s13  ;;  %s28_s16 = int_to_ptr.hbm [resolvable:$true] %s27_s16 }
   0x4   :  { %s206_s17 = smov 128   ;;  %s207_s18 = smov 8  }
   0x5   :  { %22 = dma.hbm_to_vmem [thread:$0]  %s15_s11, 256, %s17_s13, [#allocation3], %s206_s17, %s206_s17, %s207_s18  }
   0x6   :  { %s208_s19 = smov [#allocation5]  }
   0x7   :  { %s29_s20 = sshll.u32 %s208_s19, 4  ;;  %s30_s20 = int_to_ptr.vmem [resolvable:$true] %s29_s20 }
   0x8   :  { %35 = dma.hbm_to_vmem [thread:$0]  %s28_s16, 256, %s30_s20, [#allocation6], %s206_s17, %s206_s17, %s207_s18  }
   0x9   :  { %199 = dma.done.wait [#allocation3], 256  }
   0xa   :  { %200 = vsyncadd [#allocation3], 4294967040 }
   0xb   :  { %201 = dma.done.wait [#allocation6], 256  }
   0xc   :  { %202 = vsyncadd [#allocation6], 4294967040  ;;  %v44_v0 = vld [vmem:[#allocation2] sm:$0xff]  ;;  %v45_v1 = vld [vmem:[#allocation2 + $0x8] sm:$0xff]  ;;  %s209_s0 = smov [#allocation7]   ;;  %s103_s23 = sshll.u32 %s242_s2, 4  ;;  %s104_s23 = int_to_ptr.hbm [resolvable:$true] %s103_s23 }
   0xd   :  { %v46_v2 = vld [vmem:[#allocation5] sm:$0xff]  ;;  %v48_v3 = vadd.f32 1.0, %v44_v0  ;;  %v51_v4 = vmul.f32 -0.5, %v44_v0  ;;  %v57_v5 = vadd.f32 1.0, %v45_v1  ;;  %v47_v6 = vld [vmem:[#allocation5 + $0x8] sm:$0xff]  ;;  %v60_v7 = vmul.f32 -0.5, %v45_v1 }
   0xe   :  { %v66_v8 = vadd.f32 1.0, %v46_v2  ;;  %v69_v9 = vmul.f32 -0.5, %v46_v2  ;;  %v54_v11 = vand.u32 2147483647, %v44_v0  ;;  %v75_v12 = vadd.f32 1.0, %v47_v6  ;;  %s101_s1 = sshll.u32 %s209_s0, 4  ;;  %s102_s1 = int_to_ptr.vmem [resolvable:$true] %s101_s1 }
   0xf   :  { %119 = vlog2.f32 %v48_v3  ;;  %v52_v10 = vadd.f32 1.0, %v51_v4  ;;  %v61_v13 = vadd.f32 1.0, %v60_v7  ;;  %v78_v15 = vmul.f32 -0.5, %v47_v6 }
  0x10   :  { %121 = vlog2.f32 %v57_v5  ;;  %v70_v14 = vadd.f32 1.0, %v69_v9  ;;  %v63_v16 = vand.u32 2147483647, %v45_v1  ;;  %v72_v17 = vand.u32 2147483647, %v46_v2 }
  0x11   :  { %123 = vlog2.f32 %v66_v8  ;;  %v53_v18 = vmul.f32 %v52_v10, %v44_v0  ;;  %v79_v19 = vadd.f32 1.0, %v78_v15  ;;  %vm231_vm0 = vcmp.lt.f32.partialorder %v54_v11, 0.0004427343 }
  0x12   :  { %125 = vlog2.f32 %v75_v12  ;;  %v81_v22 = vand.u32 2147483647, %v47_v6  ;;  %v62_v25 = vmul.f32 %v61_v13, %v45_v1  ;;  %v71_v26 = vmul.f32 %v70_v14, %v46_v2 }
  0x13   :  { %vm64_vm1 = vcmp.lt.f32.partialorder %v63_v16, 0.0004427343  ;;  %vm73_vm2 = vcmp.lt.f32.partialorder %v72_v17, 0.0004427343  ;;  %v80_v31 = vmul.f32 %v79_v19, %v47_v6 }
  0x14   :  { %vm82_vm3 = vcmp.lt.f32.partialorder %v81_v22, 0.0004427343 }
  0x15   :  { %v120_v20 = vpop.eup %119 }
  0x16   :  { %v122_v23 = vpop.eup %121  ;;  %v50_v24 = vmul.f32 0.6931472, %v120_v20 }
  0x17   :  { %v124_v27 = vpop.eup %123  ;;  %v59_v28 = vmul.f32 0.6931472, %v122_v23 }
  0x18   :  { %v56_v29 = vsel %vm231_vm0, %v53_v18, %v50_v24  ;;  %v68_v30 = vmul.f32 0.6931472, %v124_v27  ;;  %v126_v32 = vpop.eup %125 }
  0x19   :  { %v65_v33 = vsel %vm64_vm1, %v62_v25, %v59_v28  ;;  %v77_v35 = vmul.f32 0.6931472, %v126_v32 }
  0x1a   :  { %v74_v34 = vsel %vm73_vm2, %v71_v26, %v68_v30 }
  0x1b   :  { %v84_v36 = vsub.f32 %v56_v29, %v74_v34  ;;  %v83_v37 = vsel %vm82_vm3, %v80_v31, %v77_v35 }
  0x1c   :  { %v85_v38 = vsub.f32 %v65_v33, %v83_v37 }
  0x1d   :  { %v86_v39 = vmul.f32 %v84_v36, %v84_v36 }
  0x1e   :  { %v87_v40 = vmul.f32 %v85_v38, %v85_v38 }
  0x20   :  { %v88_v41 = vadd.f32 %v87_v40, %v86_v39 }
  0x22   :  { %v89_v42 = vrot.slane %v88_v41, 4 }
  0x24   :  { %v90_v43 = vadd.f32 %v89_v42, %v88_v41 }
  0x26   :  { %v91_v44 = vrot.slane %v90_v43, 2 }
  0x28   :  { %v92_v45 = vadd.f32 %v91_v44, %v90_v43 }
  0x2a   :  { %v93_v46 = vrot.slane %v92_v45, 1 }
  0x2c   :  { %v94_v47 = vadd.f32 %v93_v46, %v92_v45 }
  0x2e   :  { %95 = vst [vmem:[#allocation7] sm:$0x1] %v94_v47 }
  0x2f   :  { %106 = dma.vmem_to_hbm [thread:$0]  %s102_s1, 16, %s104_s23, [#allocation4]  }
  0x30   :  { %203 = dma.done.wait [#allocation4], 16  }
  0x31   :  { %204 = vsyncadd [#allocation4], 4294967280 }
  0x32   :  { %111 = vsyncpa [#allocation3], 1 }
  0x33   :  { %112 = vsyncpa [#allocation6], 1 }
  0x34   :  { %113 = vsyncpa [#allocation4], 1 }

</bundles_post_ra>
